<compile_context>
chip_gen: v6e
topology: v6e:2x2x1
jax: 0.10.0
libtpu: 0.0.40
codegen_flags: <defaults>
</compile_context>

<pallas_src>
import functools

import jax
import jax.numpy as jnp
from jax.experimental import pallas as pl
from jax.experimental.pallas import tpu as pltpu


_LANES = 128
_SUBLANES = 8
_NUM_CORES = 2   # v7x has 2 TensorCores; on 1-TC parts this is just one extra grid step.


def _cdiv(a, b):
    return (a + b - 1) // b


def _vmem_budget():
    """Returns (per-input block byte budget, scoped vmem_limit_bytes)."""
    try:
        info = pltpu.get_tpu_info()
        vmem = int(getattr(info, "vmem_capacity_bytes", 0)) or (64 << 20)
    except Exception:
        vmem = 64 << 20                       # unknown chip -> assume v7x-class (small VMEM)
    blk = 4 << 20                             # ~2 inputs x 2 buffers x 4 MiB blocks
    if vmem <= (64 << 20):                    # v7x-class: 64 MiB physical per TensorCore
        return blk, int(0.75 * vmem)          # clamp scoped request well under physical
    return blk, 64 << 20                      # v5e / v6e: 128 MiB physical


def _split_grid(num_items, tile):
    """2-D (core, tile) grid bookkeeping for a streamed reduction."""
    num_tiles = _cdiv(num_items, tile)
    ncores = _NUM_CORES if num_tiles >= 2 else 1
    tpc = _cdiv(num_tiles, ncores)
    clamp = ncores * tpc > num_tiles          # phantom trailing tile on one core
    needs_mask = (ncores * tpc * tile) != num_items
    return ncores, tpc, num_tiles, clamp, needs_mask


def _row_index_map(tpc, num_tiles, clamp):
    if clamp:
        # Phantom tiles re-read the last real tile; their contribution is masked
        # to zero in-kernel (mask is computed from the *logical* tile index).
        return lambda c, i: (jnp.minimum(c * tpc + i, num_tiles - 1), 0)
    return lambda c, i: (c * tpc + i, 0)


# ----------------------------------------------------------------------------
# MSE partial sum for one (student, teacher) pair, viewed as (rows, 128) slabs.
#   out[c] holds core c's (sub_rows, 128) partial accumulator; wrapper sums it.
# ----------------------------------------------------------------------------
def _mse_kernel(a_ref, b_ref, out_ref, *,
                tile_rows, sub_rows, total_rows, tiles_per_core, needs_mask):
    i = pl.program_id(1)

    @pl.when(i == 0)
    def _():
        out_ref[...] = jnp.zeros_like(out_ref)

    d = a_ref[...].astype(jnp.float32) - b_ref[...].astype(jnp.float32)
    sq = d * d
    if needs_mask:
        row0 = (pl.program_id(0) * tiles_per_core + i) * tile_rows
        rid = row0 + jax.lax.broadcasted_iota(jnp.int32, (tile_rows, _LANES), 0)
        sq = jnp.where(rid < total_rows, sq, 0.0)
    if tile_rows != sub_rows:
        # Reduce the tile down to one (sub_rows, 128) vreg-group: tile-aligned
        # reshape + sum over the leading axis = pure VALU adds, no XLU.
        sq = jnp.sum(sq.reshape(tile_rows // sub_rows, sub_rows, _LANES), axis=0)
    out_ref[...] += sq.reshape(1, sub_rows, _LANES)


def _pair_sse_pallas(a2, b2, blk_bytes, vmem_limit):
    """a2, b2: (rows, 128) native-dtype slabs.  Returns f32 sum((a2 - b2)^2)."""
    rows = a2.shape[0]
    # Tile-size target accounts for the in-kernel f32 working set (4 B / elem).
    target = blk_bytes // (_LANES * 4)
    target = max(_SUBLANES, (target // _SUBLANES) * _SUBLANES)
    tile_rows = rows if rows <= target else target
    sub_rows = _SUBLANES if tile_rows % _SUBLANES == 0 else tile_rows

    ncores, tpc, num_tiles, clamp, needs_mask = _split_grid(rows, tile_rows)
    idx = _row_index_map(tpc, num_tiles, clamp)

    kernel = functools.partial(
        _mse_kernel, tile_rows=tile_rows, sub_rows=sub_rows, total_rows=rows,
        tiles_per_core=tpc, needs_mask=needs_mask)

    out = pl.pallas_call(
        kernel,
        out_shape=jax.ShapeDtypeStruct((ncores, sub_rows, _LANES), jnp.float32),
        grid=(ncores, tpc),
        in_specs=[
            pl.BlockSpec((tile_rows, _LANES), idx),
            pl.BlockSpec((tile_rows, _LANES), idx),
        ],
        out_specs=pl.BlockSpec((1, sub_rows, _LANES), lambda c, i: (c, 0, 0)),
        compiler_params=pltpu.CompilerParams(
            dimension_semantics=("parallel", "arbitrary"),
            vmem_limit_bytes=vmem_limit,
        ),
    )(a2, b2)
    return jnp.sum(out)   # tiny (<= 2 x 8 x 128) final reduce in the wrapper


def mse_mean_pallas(pairs):
    """mean_i( mean((student_i - teacher_i)^2) ) — one streamed kernel per pair."""
    assert len(pairs) > 0
    num_pairs = len(pairs)
    blk_bytes, vmem_limit = _vmem_budget()

    total = jnp.float32(0.0)
    for s, t in pairs:
        assert s.shape == t.shape, (s.shape, t.shape)
        n = int(s.size)
        n128 = (n // _LANES) * _LANES
        sse = jnp.float32(0.0)
        if n128 > 0:
            sf = s.reshape(-1)
            tf = t.reshape(-1)
            if n128 != n:
                sf, tf = sf[:n128], tf[:n128]
            a2 = sf.reshape(n128 // _LANES, _LANES)   # pure view for contiguous inputs
            b2 = tf.reshape(n128 // _LANES, _LANES)
            sse = sse + _pair_sse_pallas(a2, b2, blk_bytes, vmem_limit)
        if n128 != n:
            # TODO(synk): the sub-128 ragged tail is a tiny fused XLA reduction.
            ta = s.reshape(-1)[n128:].astype(jnp.float32)
            tb = t.reshape(-1)[n128:].astype(jnp.float32)
            sse = sse + jnp.sum((ta - tb) ** 2)
        total = total + sse / jnp.float32(n)
    return total / jnp.float32(num_pairs)


# ----------------------------------------------------------------------------
# Cross-entropy (mean over batch), row-tiled, no logits padding.
#   logits (N, C) native dtype, labels (N, 1) int32.  out[c] = core c's partial
#   sum of per-row losses; wrapper sums and divides by N.
# ----------------------------------------------------------------------------
def _ce_kernel(logits_ref, labels_ref, out_ref, loss_ref, *,
               tile_n, n_rows, tiles_per_core, needs_mask):
    i = pl.program_id(1)

    @pl.when(i == 0)
    def _():
        loss_ref[0] = jnp.float32(0.0)

    x = logits_ref[...].astype(jnp.float32)            # (tn, C)
    labels = labels_ref[...]                           # (tn, 1) int32
    tn, c_dim = x.shape

    row_valid = None
    if needs_mask:
        row0 = (pl.program_id(0) * tiles_per_core + i) * tile_n
        rid = row0 + jax.lax.broadcasted_iota(jnp.int32, (tn, 1), 0)
        row_valid = rid < n_rows
        x = jnp.where(row_valid, x, 0.0)               # neutralize OOB garbage before exp

    row_max = jnp.max(x, axis=-1, keepdims=True)
    shifted = x - row_max
    # TODO(synk): on v6e/v7x a bf16 exp would relieve the EUP bound for large C;
    # kept f32 here to match the reference exactly.
    lse = jnp.log(jnp.sum(jnp.exp(shifted), axis=-1, keepdims=True))

    col = jax.lax.broadcasted_iota(jnp.int32, (tn, c_dim), 1)
    tgt = jnp.sum(jnp.where(col == labels, shifted, 0.0), axis=-1, keepdims=True)

    per_row = lse - tgt                                # (tn, 1)
    if needs_mask:
        per_row = jnp.where(row_valid, per_row, 0.0)
    loss_ref[0] += jnp.sum(per_row)

    @pl.when(i == pl.num_programs(1) - 1)
    def _():
        out_ref[...] = jnp.full((1, 1, 1), loss_ref[0], dtype=jnp.float32)


def cross_entropy_pallas(logits, labels):
    # TODO(synk): PyTorch's default ignore_index=-100 is not handled (the module
    # never uses it); mean divides by the full batch size n.
    n, c = logits.shape
    blk_bytes, vmem_limit = _vmem_budget()

    # Tile rows sized on the f32 working set; halve the budget because the CE
    # body keeps several whole-tile temporaries live (shifted, exp, iota, ...).
    target = (blk_bytes // 2) // max(1, c * 4)
    target = max(_SUBLANES, (target // _SUBLANES) * _SUBLANES)
    tile_n = n if n <= target else target

    ncores, tpc, num_tiles, clamp, needs_mask = _split_grid(n, tile_n)
    idx = _row_index_map(tpc, num_tiles, clamp)

    labels2 = labels.reshape(n, 1).astype(jnp.int32)
    kernel = functools.partial(_ce_kernel, tile_n=tile_n, n_rows=n,
                               tiles_per_core=tpc, needs_mask=needs_mask)

    out = pl.pallas_call(
        kernel,
        out_shape=jax.ShapeDtypeStruct((ncores, 1, 1), jnp.float32),
        grid=(ncores, tpc),
        in_specs=[
            pl.BlockSpec((tile_n, c), idx),
            pl.BlockSpec((tile_n, 1), idx),
        ],
        out_specs=pl.BlockSpec((1, 1, 1), lambda cc, i: (cc, 0, 0)),
        scratch_shapes=[pltpu.SMEM((1,), jnp.float32)],
        compiler_params=pltpu.CompilerParams(
            dimension_semantics=("parallel", "arbitrary"),
            vmem_limit_bytes=vmem_limit,
        ),
    )(logits, labels2)
    return jnp.sum(out) / jnp.float32(n)


# ----------------------------------------------------------------------------
# CE_MSELoss forward (glue stays in plain JAX; hot reductions run in Pallas)
# ----------------------------------------------------------------------------
def ce_mse_loss(net_out, teacher_out, batch, alpha):
    out = {}
    ce_loss = cross_entropy_pallas(net_out["logits"], batch["label_id"])
    out["ce_loss"] = ce_loss

    pairs = [(f, teacher_out["feats"][i + 1]) for i, f in enumerate(net_out["feats"])]
    mse_loss = mse_mean_pallas(pairs)
    out["mse_loss"] = mse_loss

    out["loss"] = (1.0 - alpha) * ce_loss + alpha * mse_loss
    return out


if __name__ == "__main__":
    alpha = 0.5
    key = jax.random.PRNGKey(0)
    k_logits, k_lab, k_f1, k_f2, k_t0, k_t1, k_t2 = jax.random.split(key, 7)

    batch_size, num_classes = 2, 10
    logits = jax.random.normal(k_logits, (batch_size, num_classes), jnp.float32)
    label_id = jax.random.randint(k_lab, (batch_size,), 0, num_classes, jnp.int32)

    # student features (NCHW) and teacher features (one extra leading stage)
    f1 = jax.random.normal(k_f1, (2, 4, 16, 16), jnp.float32)
    f2 = jax.random.normal(k_f2, (2, 8, 8, 8), jnp.float32)
    t0 = jax.random.normal(k_t0, (2, 4, 32, 32), jnp.float32)   # unused (index offset)
    t1 = f1 + 0.1 * jax.random.normal(k_t1, f1.shape, jnp.float32)
    t2 = f2 + 0.1 * jax.random.normal(k_t2, f2.shape, jnp.float32)

    net_out = {"logits": logits, "feats": [f1, f2]}
    teacher_out = {"feats": [t0, t1, t2]}
    batch = {"label_id": label_id}

    out = ce_mse_loss(net_out, teacher_out, batch, alpha)
    jax.block_until_ready(out["loss"])

    # reference check in plain JAX
    log_probs = jax.nn.log_softmax(logits, axis=-1)
    ce_ref = -jnp.mean(log_probs[jnp.arange(batch_size), label_id])
    mse_ref = (jnp.mean((f1 - t1) ** 2) + jnp.mean((f2 - t2) ** 2)) / 2.0
    loss_ref = (1.0 - alpha) * ce_ref + alpha * mse_ref

    assert jnp.allclose(out["ce_loss"], ce_ref, rtol=1e-5, atol=1e-5), (out["ce_loss"], ce_ref)
    assert jnp.allclose(out["mse_loss"], mse_ref, rtol=1e-5, atol=1e-5), (out["mse_loss"], mse_ref)
    assert jnp.allclose(out["loss"], loss_ref, rtol=1e-5, atol=1e-5), (out["loss"], loss_ref)

    print("KERNEL_OK")
</pallas_src>

<mosaic_0001>
module attributes {stable_mosaic.version = 11 : i64} {
  func.func @_ce_kernel(%arg0: i32, %arg1: i32, %arg2: memref<2x10xf32, #tpu.memory_space<vmem>>, %arg3: memref<2x1xi32, #tpu.memory_space<vmem>>, %arg4: memref<1x1x1xf32, #tpu.memory_space<vmem>>, %arg5: memref<1xf32, #tpu.memory_space<smem>>) attributes {dimension_semantics = [#tpu.dimension_semantics<parallel>, #tpu.dimension_semantics<arbitrary>], iteration_bounds = array<i64: 1, 1>, scalar_prefetch = 0 : i64, scratch_operands = 1 : i64, tpu.core_type = #tpu.core_type<tc>, window_params = [{transform_indices = @transform_0, window_bounds = array<i64: 2, 10>}, {transform_indices = @transform_1, window_bounds = array<i64: 2, 1>}, {transform_indices = @transform_2, window_bounds = array<i64: 1, 1, 1>}]} {
    %c0_i32 = arith.constant 0 : i32
    %0 = arith.cmpi eq, %arg1, %c0_i32 : i32
    %1 = arith.extui %0 : i1 to i32
    %c0_i32_0 = arith.constant 0 : i32
    %2 = arith.cmpi ne, %1, %c0_i32_0 : i32
    scf.if %2 {
      %cst_12 = arith.constant 0.000000e+00 : f32
      %c0_13 = arith.constant 0 : index
      %31 = memref.load %arg5[%c0_13] : memref<1xf32, #tpu.memory_space<smem>>
      memref.store %cst_12, %arg5[%c0_13] : memref<1xf32, #tpu.memory_space<smem>>
    } else {
    }
    %c0 = arith.constant 0 : index
    %c0_1 = arith.constant 0 : index
    %3 = vector.load %arg2[%c0, %c0_1] : memref<2x10xf32, #tpu.memory_space<vmem>>, vector<2x10xf32>
    %c0_2 = arith.constant 0 : index
    %c0_3 = arith.constant 0 : index
    %4 = vector.load %arg3[%c0_2, %c0_3] : memref<2x1xi32, #tpu.memory_space<vmem>>, vector<2x1xi32>
    %cst = arith.constant dense<0xFF800000> : vector<2xf32>
    %5 = vector.multi_reduction <maximumf>, %3, %cst [1] : vector<2x10xf32> to vector<2xf32>
    %6 = vector.shape_cast %5 : vector<2xf32> to vector<2x1xf32>
    %7 = vector.broadcast %6 : vector<2x1xf32> to vector<2x10xf32>
    %8 = arith.subf %3, %7 : vector<2x10xf32>
    %9 = math.exp %8 : vector<2x10xf32>
    %cst_4 = arith.constant dense<0.000000e+00> : vector<2xf32>
    %10 = vector.multi_reduction <add>, %9, %cst_4 [1] : vector<2x10xf32> to vector<2xf32>
    %11 = vector.shape_cast %10 : vector<2xf32> to vector<2x1xf32>
    %12 = math.log %11 : vector<2x1xf32>
    %13 = tpu.iota {dimensions = array<i32: 1>} : vector<2x10xi32>
    %14 = vector.broadcast %4 : vector<2x1xi32> to vector<2x10xi32>
    %15 = arith.cmpi eq, %13, %14 : vector<2x10xi32>
    %cst_5 = arith.constant 0.000000e+00 : f32
    %16 = vector.broadcast %cst_5 : f32 to vector<2x10xf32>
    %17 = arith.select %15, %8, %16 : vector<2x10xi1>, vector<2x10xf32>
    %cst_6 = arith.constant dense<0.000000e+00> : vector<2xf32>
    %18 = vector.multi_reduction <add>, %17, %cst_6 [1] : vector<2x10xf32> to vector<2xf32>
    %19 = vector.shape_cast %18 : vector<2xf32> to vector<2x1xf32>
    %20 = arith.subf %12, %19 : vector<2x1xf32>
    %c0_7 = arith.constant 0 : index
    %21 = memref.load %arg5[%c0_7] : memref<1xf32, #tpu.memory_space<smem>>
    %22 = vector.shape_cast %20 : vector<2x1xf32> to vector<1x2x1xf32>
    %cst_8 = arith.constant dense<0.000000e+00> : vector<1xf32>
    %23 = vector.multi_reduction <add>, %22, %cst_8 [1, 2] : vector<1x2x1xf32> to vector<1xf32>
    %24 = vector.shape_cast %23 : vector<1xf32> to vector<1x1x1xf32>
    %25 = vector.extract %24[0, 0, 0] : f32 from vector<1x1x1xf32>
    %26 = arith.addf %21, %25 : f32
    %c0_9 = arith.constant 0 : index
    %27 = memref.load %arg5[%c0_9] : memref<1xf32, #tpu.memory_space<smem>>
    memref.store %26, %arg5[%c0_9] : memref<1xf32, #tpu.memory_space<smem>>
    %c0_i32_10 = arith.constant 0 : i32
    %28 = arith.cmpi eq, %arg1, %c0_i32_10 : i32
    %29 = arith.extui %28 : i1 to i32
    %c0_i32_11 = arith.constant 0 : i32
    %30 = arith.cmpi ne, %29, %c0_i32_11 : i32
    scf.if %30 {
      %c0_12 = arith.constant 0 : index
      %31 = memref.load %arg5[%c0_12] : memref<1xf32, #tpu.memory_space<smem>>
      %32 = vector.broadcast %31 : f32 to vector<1x1x1xf32>
      %c0_13 = arith.constant 0 : index
      %c0_14 = arith.constant 0 : index
      %c0_15 = arith.constant 0 : index
      %33 = vector.load %arg4[%c0_13, %c0_14, %c0_15] : memref<1x1x1xf32, #tpu.memory_space<vmem>>, vector<1x1x1xf32>
      tpu.vector_store %arg4[%c0_13, %c0_14, %c0_15], %32 {strides = array<i32>} : memref<1x1x1xf32, #tpu.memory_space<vmem>>, vector<1x1x1xf32>,
    } else {
    }
    return
  }
  func.func @transform_0(%arg0: i32, %arg1: i32) -> (i32, i32) {
    %c1_i32 = arith.constant 1 : i32
    %0 = arith.muli %arg0, %c1_i32 : i32
    %1 = arith.addi %0, %arg1 : i32
    %c0_i32 = arith.constant 0 : i32
    %c0_i32_0 = arith.constant 0 : i32
    return %1, %c0_i32 : i32, i32
  }
  func.func @transform_1(%arg0: i32, %arg1: i32) -> (i32, i32) {
    %c1_i32 = arith.constant 1 : i32
    %0 = arith.muli %arg0, %c1_i32 : i32
    %1 = arith.addi %0, %arg1 : i32
    %c0_i32 = arith.constant 0 : i32
    %c0_i32_0 = arith.constant 0 : i32
    return %1, %c0_i32 : i32, i32
  }
  func.func @transform_2(%arg0: i32, %arg1: i32) -> (i32, i32, i32) {
    %c0_i32 = arith.constant 0 : i32
    %c0_i32_0 = arith.constant 0 : i32
    %c0_i32_1 = arith.constant 0 : i32
    return %arg0, %c0_i32, %c0_i32_0 : i32, i32, i32
  }
}

</mosaic_0001>

<bundles_post_ra>
// kernel: tpu_custom_call.1
= control target key start
LH: loop header
LB: loop body
LE: loop exit
PB: predicated region body
PF: predicated region fallthrough
CT: control target
= control target key end

     0   :  { %vm54_vm0 = vcmask 74752   ;;  %v156_v2 = vmov 0   ;;  %s185_s0 = inlined_call_operand.vmem [shape: f32[2,10], index: 0, kind: input, shape index: {}]   ;;  %s186_s1 = inlined_call_operand.vmem [shape: s32[2,1], index: 1, kind: input, shape index: {}]   ;;  %s187_s2 = inlined_call_operand.hbm [shape: f32[1,1,1], index: 2, kind: output, shape index: {}]  }
   0x1   :  { %v52_v0 = vld [vmem:[%s185_s0] sm:$0x3]  ;;  %129 = vset.pattern.permute.xlu0 %v156_v2 }
   0x2   :  { %v55_v1 = vsel %vm54_vm0, %v52_v0, -inf }
   0x3   :  { %7 = vsyncpa [#allocation4], 0  ;;  %56 = vmax.xlane.f32.xlu0 %v55_v1  ;;  %v53_v3 = vld [vmem:[%s186_s1] sm:$0x3]  ;;  %v66_v7 = vlaneseq  ;;  %vm78_vm2 = vcmask 1024   ;;  %s157_s0 = smov [#allocation3]  }
   0x4   :  { %s105_s1 = sshll.u32 %s157_s0, 4  ;;  %vm97_vm3 = vcmask 0   ;;  %s106_s1 = int_to_ptr.vmem [resolvable:$true] %s105_s1 }
   0x5   :  { %v67_v8 = vand.u32 127, %v66_v7  ;;  %s134_s14 = scalar_lea.vmem %s106_s1, 16  ;;  %s138_s15 = scalar_lea.vmem %s106_s1, 32 }
   0x6   :  { %p135_p0 = scmp.ne.s32.totalorder %s106_s1, %s134_s14  ;;  %p139_p1 = scmp.lt.s32.totalorder %s106_s1, %s106_s1 }
   0x7   :  { %p140_p2 = scmp.lt.s32.totalorder %s138_s15, %s134_s14 }
   0x9   :  { %p141_p3 = por %p140_p2, %p139_p1 }
   0xb   :  { %p142_p4 = pnand %p141_p3, %p135_p0 }
  0x19   :  { %69 = vperm.xlu0 %129, %v53_v3  }
  0x8c   :  { %v57_v4 = vpop.xlane.xlu0 %56 }
  0x8d   :  { %v58_v5 = vsub.f32 %v52_v0, %v57_v4 }
  0x8f   :  { %v59_v6 = vmul.f32 1.442695, %v58_v5 }
  0x91   :  { %130 = vpow2.f32 %v59_v6 }
  0x94   :  { %v70_v9 = vpop.permute.xlu0 %69 }
  0x95   :  { %vm71_vm1 = vcmp.eq.s32.totalorder %v67_v8, %v70_v9 }
  0x96   :  { %v72_v12 = vsel %vm71_vm1, %v58_v5, 0.0 }
  0x97   :  { %v73_v13 = vsel %vm54_vm0, %v72_v12, 0.0 }
  0x9e   :  { %v131_v10 = vpop.eup %130 }
  0x9f   :  { %v61_v11 = vsel %vm54_vm0, %v131_v10, 0.0 }
  0xa0   :  { %62 = vadd.xlane.f32.xlu1 %v61_v11 }
  0xa4   :  { %74 = vadd.xlane.f32.xlu1 %v73_v13 }
 0x129   :  { %v63_v14 = vpop.xlane.xlu1 %62 }
 0x12a   :  { %132 = vlog2.f32 %v63_v14 }
 0x12d   :  { %v75_v17 = vpop.xlane.xlu1 %74 }
 0x137   :  { %v133_v15 = vpop.eup %132 }
 0x138   :  { %v65_v16 = vmul.f32 0.6931472, %v133_v15 }
 0x13a   :  { %v76_v18 = vsub.f32 %v65_v16, %v75_v17 }
 0x13c   :  { %v79_v19 = vsel %vm78_vm2, %v76_v18, 0.0 }
 0x13d   :  { %80 = vadd.xlane.f32.xlu1 %v79_v19 }
 0x1c6   :  { %v81_v20 = vpop.xlane.xlu1 %80 }
 0x1c7   :  { %v82_v21 = vrot.slane %v81_v20, 4 }
 0x1c9   :  { %v83_v22 = vadd.f32 %v82_v21, %v81_v20 }
 0x1cb   :  { %v84_v23 = vrot.slane %v83_v22, 2 }
 0x1cd   :  { %v85_v24 = vadd.f32 %v84_v23, %v83_v22 }
 0x1cf   :  { %v86_v25 = vrot.slane %v85_v24, 1 }
 0x1d1   :  { %v87_v26 = vadd.f32 %v86_v25, %v85_v24 }
 0x1d3   :  { %125 = vpush %v87_v26 }
 0x204   :  { %s126_s13 = spop %125 }
 0x205   :  { %v96_v27 = vstv %s126_s13 }
 0x206   :  { %98 = vst.msk [vmem:[#allocation3] sm:$0x1] %vm97_vm3, %v96_v27 }
 0x207   :  { %145 = shalt.err (!%p142_p4)
}
 0x208   :  { %108 = dma.vmem_to_hbm [thread:$0]  %s106_s1, 16, %s187_s2, [#allocation4]  }
 0x209   :  { %154 = dma.done.wait [#allocation4], 16  }
 0x20a   :  { %155 = vsyncadd [#allocation4], 4294967280 }
 0x20b   :  { %112 = vsyncpa [#allocation4], 1 }

</bundles_post_ra>
